<compile_context>
chip_gen: v7x
topology: tpu7x:2x2x1
jax: 0.10.0
libtpu: 0.0.40
codegen_flags: <defaults>
</compile_context>

<pallas_src>
import jax
import jax.numpy as jnp
from jax.experimental import pallas as pl
from jax.experimental.pallas import tpu as pltpu


def _attention_fusion_kernel(s_ref, d_ref, w1_ref, b1_ref, w2_ref, b2_ref, o_ref):
    # s_ref, d_ref, o_ref : (C, TILE_P)   -- pixel axis last (lane-dense)
    # w1_ref : (Cr, C),  b1_ref : (Cr, 1) f32
    # w2_ref : (C, Cr),  b2_ref : (C, 1)  f32
    s = s_ref[...]
    d = d_ref[...]

    # conv1x1 #1 (+ folded BN1) + ReLU  -- native-dtype MXU, f32 accumulate
    h = jnp.dot(w1_ref[...], s, preferred_element_type=jnp.float32) + b1_ref[...]
    h = jnp.maximum(h, 0.0)

    # conv1x1 #2 (+ folded BN2) + Sigmoid
    logits = jnp.dot(w2_ref[...], h.astype(w2_ref.dtype),
                     preferred_element_type=jnp.float32) + b2_ref[...]
    sw = jax.nn.sigmoid(logits)

    # merge = s + d * sw   (computed in the input dtype; f32 inputs stay exact)
    o_ref[...] = (s + d * sw.astype(s.dtype)).astype(o_ref.dtype)


def _choose_tile_px(P, C, itemsize, target_bytes, batch, min_total_steps=4):
    """Pick a lane-dense pixel tile that avoids any host-side padding."""
    lane = 128
    if P <= lane:
        return P  # full pixel axis in one (legal full-extent) block

    target_px = max(lane, ((target_bytes // max(1, C * itemsize)) // lane) * lane)

    if P % lane == 0:
        tile = min(target_px, P)
        # shrink to an exact (128-multiple) divisor of P -> no boundary block
        while tile > lane and P % tile != 0:
            tile -= lane
    else:
        # ragged P: 128-multiple tile, grid uses cdiv and Pallas masks the edge
        tile = min(target_px, ((P + lane - 1) // lane) * lane)

    # v7x megacore hygiene: prefer >= 2 grid steps per TensorCore (>= 4 total)
    def steps(t):
        return batch * ((P + t - 1) // t)

    while steps(tile) < min_total_steps and tile > lane:
        new_tile = max(lane, ((tile // 2) // lane) * lane)
        if new_tile == tile:
            break
        tile = new_tile
    return tile


def attention_at_fusion(s, d, w1, b1, w2, b2, *, tile_px=None,
                        target_block_bytes=4 * 1024 * 1024,
                        vmem_limit_bytes=48 * 1024 * 1024):
    """s, d: (B, C, H, W).  w1: (Cr, C), b1: (Cr,), w2: (C, Cr), b2: (C,).

    Weights/biases are the BN-folded 1x1-conv parameters in (Cout, Cin)
    layout (the squeezed PyTorch Conv2d weight orientation).
    """
    B, C, H, W = s.shape
    Cr = w1.shape[0]
    P = H * W

    # Free reshape to (B, C, P): native NCHW, pixel axis last (lane dimension).
    s3 = s.reshape(B, C, P)
    d3 = d.reshape(B, C, P)

    itemsize = jnp.dtype(s.dtype).itemsize
    if tile_px is None:
        tile_px = _choose_tile_px(P, C, itemsize, target_block_bytes, B)
    tile_px = min(tile_px, P)

    n_px_tiles = pl.cdiv(P, tile_px)
    grid = (B, n_px_tiles)

    # Weights in the input compute dtype (cast once on host); biases stay f32.
    w1c = w1.astype(s.dtype)
    w2c = w2.astype(s.dtype)
    b1_2d = b1.astype(jnp.float32).reshape(Cr, 1)
    b2_2d = b2.astype(jnp.float32).reshape(C, 1)

    out3 = pl.pallas_call(
        _attention_fusion_kernel,
        out_shape=jax.ShapeDtypeStruct((B, C, P), s.dtype),
        grid=grid,
        in_specs=[
            pl.BlockSpec((None, C, tile_px), lambda b, j: (b, 0, j)),  # s
            pl.BlockSpec((None, C, tile_px), lambda b, j: (b, 0, j)),  # d
            pl.BlockSpec((Cr, C), lambda b, j: (0, 0)),                # w1 (BN1 folded)
            pl.BlockSpec((Cr, 1), lambda b, j: (0, 0)),                # b1
            pl.BlockSpec((C, Cr), lambda b, j: (0, 0)),                # w2 (BN2 folded)
            pl.BlockSpec((C, 1), lambda b, j: (0, 0)),                 # b2
        ],
        out_specs=pl.BlockSpec((None, C, tile_px), lambda b, j: (b, 0, j)),
        compiler_params=pltpu.CompilerParams(
            dimension_semantics=("parallel", "parallel"),
            vmem_limit_bytes=vmem_limit_bytes,
        ),
    )(s3, d3, w1c, b1_2d, w2c, b2_2d)

    return out3.reshape(B, C, H, W)


def fold_bn_into_conv(w, b, gamma, beta, mean, var, eps=1e-5):
    """Fold eval-mode BatchNorm into a preceding 1x1 conv.
    w: (Cout, Cin), b: (Cout,).  Returns (w_folded, b_folded)."""
    scale = gamma / jnp.sqrt(var + eps)
    w_f = w * scale[:, None]
    b_f = (b - mean) * scale + beta
    return w_f, b_f


def make_params(channel, reduction, key):
    """Deterministic synthetic parameters mirroring the PyTorch module shapes."""
    cr = channel // reduction
    keys = jax.random.split(key, 8)
    # conv1 weight: (Cr, C), conv2 weight: (C, Cr) — squeezed PyTorch 1x1 Conv2d.
    w1 = jax.random.normal(keys[0], (cr, channel), jnp.float32) * 0.1
    b1 = jax.random.normal(keys[1], (cr,), jnp.float32) * 0.1
    w2 = jax.random.normal(keys[2], (channel, cr), jnp.float32) * 0.1
    b2 = jax.random.normal(keys[3], (channel,), jnp.float32) * 0.1
    # BN1 / BN2 affine + running stats (deterministic, non-trivial).
    g1 = 1.0 + 0.1 * jax.random.normal(keys[4], (cr,), jnp.float32)
    be1 = 0.1 * jax.random.normal(keys[5], (cr,), jnp.float32)
    m1 = jnp.zeros((cr,), jnp.float32)
    v1 = jnp.ones((cr,), jnp.float32)
    g2 = 1.0 + 0.1 * jax.random.normal(keys[6], (channel,), jnp.float32)
    be2 = 0.1 * jax.random.normal(keys[7], (channel,), jnp.float32)
    m2 = jnp.zeros((channel,), jnp.float32)
    v2 = jnp.ones((channel,), jnp.float32)

    w1_f, b1_f = fold_bn_into_conv(w1, b1, g1, be1, m1, v1)
    w2_f, b2_f = fold_bn_into_conv(w2, b2, g2, be2, m2, v2)
    return w1_f, b1_f, w2_f, b2_f


def reference(s, d, w1, b1, w2, b2):
    """Pure-JAX reference (same folded params)."""
    B, C, H, W = s.shape
    x = s.reshape(B, C, H * W).astype(jnp.float32)
    h = jnp.maximum(jnp.einsum('rc,bcp->brp', w1, x) + b1[None, :, None], 0.0)
    sw = jax.nn.sigmoid(jnp.einsum('cr,brp->bcp', w2, h) + b2[None, :, None])
    sw = sw.reshape(B, C, H, W)
    return s + d * sw.astype(s.dtype)


if __name__ == "__main__":
    key = jax.random.PRNGKey(0)
    k_s, k_d, k_p, k_s2, k_d2 = jax.random.split(key, 5)

    # ---- case 1: P is a multiple of 128 (exact tiling, no boundary block) ----
    B, C, H, W = 2, 8, 16, 16
    reduction = 4
    s = jax.random.normal(k_s, (B, C, H, W), jnp.float32)
    d = jax.random.normal(k_d, (B, C, H, W), jnp.float32)
    w1, b1, w2, b2 = make_params(C, reduction, k_p)

    out = attention_at_fusion(s, d, w1, b1, w2, b2)
    out = jax.block_until_ready(out)
    ref = reference(s, d, w1, b1, w2, b2)
    assert out.shape == (B, C, H, W)
    assert jnp.allclose(out, ref, atol=1e-5, rtol=1e-5), "mismatch vs reference (aligned P)"

    # ---- case 2: ragged P (boundary block masked by Pallas, no host pad) ----
    B2, H2, W2 = 1, 20, 15  # P = 300, not a multiple of 128
    s2 = jax.random.normal(k_s2, (B2, C, H2, W2), jnp.float32)
    d2 = jax.random.normal(k_d2, (B2, C, H2, W2), jnp.float32)
    out2 = attention_at_fusion(s2, d2, w1, b1, w2, b2)
    out2 = jax.block_until_ready(out2)
    ref2 = reference(s2, d2, w1, b1, w2, b2)
    assert out2.shape == (B2, C, H2, W2)
    assert jnp.allclose(out2, ref2, atol=1e-5, rtol=1e-5), "mismatch vs reference (ragged P)"

    print("KERNEL_OK")
</pallas_src>

<mosaic_0001>
module attributes {stable_mosaic.version = 11 : i64} {
  func.func @_attention_fusion_kernel(%arg0: i32, %arg1: i32, %arg2: memref<1x8x128xf32, #tpu.memory_space<vmem>>, %arg3: memref<1x8x128xf32, #tpu.memory_space<vmem>>, %arg4: memref<2x8xf32, #tpu.memory_space<vmem>>, %arg5: memref<2x1xf32, #tpu.memory_space<vmem>>, %arg6: memref<8x2xf32, #tpu.memory_space<vmem>>, %arg7: memref<8x1xf32, #tpu.memory_space<vmem>>, %arg8: memref<1x8x128xf32, #tpu.memory_space<vmem>>) attributes {dimension_semantics = [#tpu.dimension_semantics<parallel>, #tpu.dimension_semantics<parallel>], iteration_bounds = array<i64: 2, 2>, scalar_prefetch = 0 : i64, scratch_operands = 0 : i64, tpu.core_type = #tpu.core_type<tc>, window_params = [{transform_indices = @transform_0, window_bounds = array<i64: 1, 8, 128>}, {transform_indices = @transform_1, window_bounds = array<i64: 1, 8, 128>}, {pipeline_mode = #tpu.pipeline_mode<synchronous>, transform_indices = @transform_2, window_bounds = array<i64: 2, 8>}, {pipeline_mode = #tpu.pipeline_mode<synchronous>, transform_indices = @transform_3, window_bounds = array<i64: 2, 1>}, {pipeline_mode = #tpu.pipeline_mode<synchronous>, transform_indices = @transform_4, window_bounds = array<i64: 8, 2>}, {pipeline_mode = #tpu.pipeline_mode<synchronous>, transform_indices = @transform_5, window_bounds = array<i64: 8, 1>}, {transform_indices = @transform_6, window_bounds = array<i64: 1, 8, 128>}]} {
    %c0 = arith.constant 0 : index
    %c0_0 = arith.constant 0 : index
    %c0_1 = arith.constant 0 : index
    %0 = vector.load %arg2[%c0, %c0_0, %c0_1] : memref<1x8x128xf32, #tpu.memory_space<vmem>>, vector<1x8x128xf32>
    %1 = vector.shape_cast %0 : vector<1x8x128xf32> to vector<8x128xf32>
    %c0_2 = arith.constant 0 : index
    %c0_3 = arith.constant 0 : index
    %c0_4 = arith.constant 0 : index
    %2 = vector.load %arg3[%c0_2, %c0_3, %c0_4] : memref<1x8x128xf32, #tpu.memory_space<vmem>>, vector<1x8x128xf32>
    %3 = vector.shape_cast %2 : vector<1x8x128xf32> to vector<8x128xf32>
    %c0_5 = arith.constant 0 : index
    %c0_6 = arith.constant 0 : index
    %4 = vector.load %arg4[%c0_5, %c0_6] : memref<2x8xf32, #tpu.memory_space<vmem>>, vector<2x8xf32>
    %cst = arith.constant dense<0.000000e+00> : vector<2x128xf32>
    %5 = tpu.matmul %4, %1, %cst {dimension_numbers = #tpu.dot_dimension_numbers<[1], [0], [0], [1], [0, 0, 1, 1], [], []>} : vector<2x8xf32>, vector<8x128xf32>, vector<2x128xf32> -> vector<2x128xf32>
    %c0_7 = arith.constant 0 : index
    %c0_8 = arith.constant 0 : index
    %6 = vector.load %arg5[%c0_7, %c0_8] : memref<2x1xf32, #tpu.memory_space<vmem>>, vector<2x1xf32>
    %7 = vector.broadcast %6 : vector<2x1xf32> to vector<2x128xf32>
    %8 = arith.addf %5, %7 : vector<2x128xf32>
    %cst_9 = arith.constant 0.000000e+00 : f32
    %9 = vector.broadcast %cst_9 : f32 to vector<2x128xf32>
    %10 = arith.maximumf %8, %9 : vector<2x128xf32>
    %c0_10 = arith.constant 0 : index
    %c0_11 = arith.constant 0 : index
    %11 = vector.load %arg6[%c0_10, %c0_11] : memref<8x2xf32, #tpu.memory_space<vmem>>, vector<8x2xf32>
    %cst_12 = arith.constant dense<0.000000e+00> : vector<8x128xf32>
    %12 = tpu.matmul %11, %10, %cst_12 {dimension_numbers = #tpu.dot_dimension_numbers<[1], [0], [0], [1], [0, 0, 1, 1], [], []>} : vector<8x2xf32>, vector<2x128xf32>, vector<8x128xf32> -> vector<8x128xf32>
    %c0_13 = arith.constant 0 : index
    %c0_14 = arith.constant 0 : index
    %13 = vector.load %arg7[%c0_13, %c0_14] : memref<8x1xf32, #tpu.memory_space<vmem>>, vector<8x1xf32>
    %14 = vector.broadcast %13 : vector<8x1xf32> to vector<8x128xf32>
    %15 = arith.addf %12, %14 : vector<8x128xf32>
    %16 = arith.negf %15 : vector<8x128xf32>
    %17 = math.exp %16 : vector<8x128xf32>
    %cst_15 = arith.constant 1.000000e+00 : f32
    %18 = vector.broadcast %cst_15 : f32 to vector<8x128xf32>
    %19 = arith.addf %18, %17 : vector<8x128xf32>
    %20 = arith.divf %18, %19 : vector<8x128xf32>
    %21 = arith.mulf %3, %20 : vector<8x128xf32>
    %22 = arith.addf %1, %21 : vector<8x128xf32>
    %c0_16 = arith.constant 0 : index
    %c0_17 = arith.constant 0 : index
    %c0_18 = arith.constant 0 : index
    %23 = vector.load %arg8[%c0_16, %c0_17, %c0_18] : memref<1x8x128xf32, #tpu.memory_space<vmem>>, vector<1x8x128xf32>
    %24 = vector.shape_cast %23 : vector<1x8x128xf32> to vector<8x128xf32>
    %25 = vector.shape_cast %22 : vector<8x128xf32> to vector<1x8x128xf32>
    tpu.vector_store %arg8[%c0_16, %c0_17, %c0_18], %25 {strides = array<i32>} : memref<1x8x128xf32, #tpu.memory_space<vmem>>, vector<1x8x128xf32>,
    return
  }
  func.func @transform_0(%arg0: i32, %arg1: i32) -> (i32, i32, i32) {
    %c0_i32 = arith.constant 0 : i32
    %c0_i32_0 = arith.constant 0 : i32
    return %arg0, %c0_i32, %arg1 : i32, i32, i32
  }
  func.func @transform_1(%arg0: i32, %arg1: i32) -> (i32, i32, i32) {
    %c0_i32 = arith.constant 0 : i32
    %c0_i32_0 = arith.constant 0 : i32
    return %arg0, %c0_i32, %arg1 : i32, i32, i32
  }
  func.func @transform_2(%arg0: i32, %arg1: i32) -> (i32, i32) {
    %c0_i32 = arith.constant 0 : i32
    %c0_i32_0 = arith.constant 0 : i32
    %c0_i32_1 = arith.constant 0 : i32
    return %c0_i32, %c0_i32_0 : i32, i32
  }
  func.func @transform_3(%arg0: i32, %arg1: i32) -> (i32, i32) {
    %c0_i32 = arith.constant 0 : i32
    %c0_i32_0 = arith.constant 0 : i32
    %c0_i32_1 = arith.constant 0 : i32
    return %c0_i32, %c0_i32_0 : i32, i32
  }
  func.func @transform_4(%arg0: i32, %arg1: i32) -> (i32, i32) {
    %c0_i32 = arith.constant 0 : i32
    %c0_i32_0 = arith.constant 0 : i32
    %c0_i32_1 = arith.constant 0 : i32
    return %c0_i32, %c0_i32_0 : i32, i32
  }
  func.func @transform_5(%arg0: i32, %arg1: i32) -> (i32, i32) {
    %c0_i32 = arith.constant 0 : i32
    %c0_i32_0 = arith.constant 0 : i32
    %c0_i32_1 = arith.constant 0 : i32
    return %c0_i32, %c0_i32_0 : i32, i32
  }
  func.func @transform_6(%arg0: i32, %arg1: i32) -> (i32, i32, i32) {
    %c0_i32 = arith.constant 0 : i32
    %c0_i32_0 = arith.constant 0 : i32
    return %arg0, %c0_i32, %arg1 : i32, i32, i32
  }
}

</mosaic_0001>

<bundles_post_ra>
// kernel: tpu_custom_call.1
= control target key start
LH: loop header
LB: loop body
LE: loop exit
PB: predicated region body
PF: predicated region fallthrough
CT: control target
= control target key end

     0   :  { %s1227_s0 = inlined_call_operand.hbm [shape: f32[2,8,256], index: 0, kind: input, shape index: {}]   ;;  %s1228_s1 = inlined_call_operand.hbm [shape: f32[2,8,256], index: 1, kind: input, shape index: {}]   ;;  %s1229_s2 = inlined_call_operand.vmem [shape: f32[2,8], index: 2, kind: input, shape index: {}]   ;;  %s1230_s3 = inlined_call_operand.vmem [shape: f32[2,1], index: 3, kind: input, shape index: {}]   ;;  %s1231_s4 = inlined_call_operand.vmem [shape: f32[8,2], index: 4, kind: input, shape index: {}]   ;;  %s1232_s5 = inlined_call_operand.vmem [shape: f32[8,1], index: 5, kind: input, shape index: {}]   ;;  %s1233_s6 = inlined_call_operand.hbm [shape: f32[2,8,256], index: 6, kind: output, shape index: {}]  }
   0x1   :  { %1241 = sst [smem:[#allocation14_spill]] %s1227_s0 }
   0x2   :  { %11 = vsyncpa [#allocation3], 0 }
   0x3   :  { %13 = vsyncpa [#allocation3 + $0x1], 0 }
   0x4   :  { %14 = vsyncpa [#allocation6], 0 }
   0x5   :  { %16 = vsyncpa [#allocation6 + $0x1], 0 }
   0x6   :  { %17 = vsyncpa [#allocation4], 0 }
   0x7   :  { %19 = vsyncpa [#allocation4 + $0x1], 0  ;;  %s963_s21 = smov 0   ;;  %s965_s22 = smov 0  }
   0x8   :  { %s967_s23 = smov 0   ;;  %s969_s24 = smov 0  }
   0x9   :  { %s971_s25 = smov 0   ;;  %s973_s26 = smov 0  }
   0xa   :  { %s975_s27 = smov 0   ;;  %s977_s28 = smov 0  }
   0xb LB: > { %1242 = sst [smem:[#allocation11_spill]] %s916_s27  ;;  %s630_s29 = sadd.s32 4294967295, %s920_s28   ;;  %s920_s28 = sphi %s977_s28, %s25_s28   ;;  %s916_s27 = sphi %s975_s27, %s1262_s27   ;;  %s912_s26 = sphi %s973_s26, %s1267_s26   ;;  %s908_s25 = sphi %s971_s25, %s1260_s25   ;;  %s904_s24 = sphi %s969_s24, %s1266_s24   ;;  %s900_s23 = sphi %s967_s23, %s1265_s23   ;;  %s896_s22 = sphi %s965_s22, %s1264_s22   ;;  %s892_s21 = sphi %s963_s21, %s1263_s21  }
   0xc   : > { %s631_s30 = sadd.s32 4294967294, %s920_s28   ;;  %s34_s7 = sadd.s32 1, %s912_s26 }
   0xd   : > { %s37_s8 = sadd.s32 1, %s916_s27  ;;  %p35_p0 = scmp.ge.s32.totalorder %s34_s7, 2 }
   0xe   : > { %s46_s9 = sadd.s32 1, %s900_s23  ;;  %p53_p1 = scmp.ne.s32.totalorder %s900_s23, %s896_s22 }
   0xf   : > { %p54_p2 = scmp.eq.s32.totalorder %s920_s28, 0  ;;  %s1269_s7 = smov (%p35_p0, %s34_s7), 0 }
  0x10   : > { %1243 = sst [smem:[#allocation12_spill]] %s1269_s7  ;;  %s1271_s8 = smov (!%p35_p0, %s37_s8), %s916_s27 }
  0x11   : > { %s42_s10 = ssub.s32 %s912_s26, %s1269_s7  ;;  %p1016_p3 = por %p54_p2, %p53_p1 }
  0x12   : > { %p39_p4 = scmp.ge.s32.totalorder %s1271_s8, 2  ;;  %p59_p5 = scmp.ne.s32.totalorder %s896_s22, %s892_s21 }
  0x13   : > { %p60_p6 = scmp.eq.s32.totalorder %s630_s29, 0  ;;  %p197_p7 = scmp.eq.s32.totalorder %s630_s29, 3 }
  0x14   : > { %s1273_s8 = smov (%p39_p4, %s1271_s8), 0  ;;  %p203_p10 = scmp.eq.s32.totalorder %s631_s30, 3 }
  0x15   : > { %1245 = sst [smem:[#allocation13_spill]] %s1273_s8  ;;  %p1024_p8 = por %p60_p6, %p59_p5 }
  0x16   : > { %p1028_p9 = por %p197_p7, %p53_p1  ;;  %s41_s14 = ssub.s32 %s916_s27, %s1273_s8 }
  0x17   : > { %s1246_s12 = scalar_select %p1024_p8, 1, 0 }
  0x18   : > { %s1247_s13 = scalar_select %p1028_p9, 1, 0 }
  0x19   : > { %s43_s15 = sor.u32 %s42_s10, %s41_s14  ;;  %p1034_p12 = por %p203_p10, %p59_p5 }
  0x1a   : > { %p44_p11 = scmp.eq.s32.totalorder %s43_s15, 0  ;;  %p684_p13 = scmp.lt.s32.totalorder %s920_s28, 4 }
  0x1b   : > { %s1248_s16 = scalar_select %p1034_p12, 1, 0 }
  0x1c   : > { %s1040_s17 = sand.u32 1, %s900_s23   ;;  %s635_s20 = sshll.u32 %s916_s27, 1 }
  0x1d   : > { %s1043_s18 = scalar_select %p44_p11, %s900_s23, %s46_s9  }
  0x1e   : > { %s1236_s19 = sshll.u32 %s1040_s17, 3  ;;  %s1048_s29 = sadd.s32 %s912_s26, %s635_s20 }
  0x1f   : > { %s239_s30 = scalar_lea.vmem [#allocation2], %s1236_s19  ;;  %s1237_s14 = sshll.u32 %s1048_s29, 7 }
  0x20   : > { %s248_s10 = sshll.u32 %s239_s30, 4  ;;  %s1249_s0 = sld [smem:[#allocation14_spill]]  ;;  %s1053_s10 = int_to_ptr.vmem [resolvable:$true] %s248_s10 }
  0x21   : > { %p1064_p0 = pnand %p684_p13, %p1016_p3  ;;  %s236_s20 = scalar_lea.sflag [#allocation3], %s1040_s17 }
  0x23   : > { %p760_p5 = pneg %p1064_p0 }
  0x26   : > { %s1060_s7 = scalar_lea.hbm %s1249_s0, %s1237_s14  ;;  %s763_s15 = scalar_lea.hbm %s1249_s0, 512 }
  0x27   : > { %s758_s30 = scalar_lea.hbm %s1060_s7, 128  ;;  %p764_p3 = scmp.lt.u32.totalorder %s1060_s7, %s1249_s0 }
  0x28   : > { %p759_p4 = scmp.ne.s32.totalorder %s1060_s7, %s758_s30  ;;  %p765_p10 = scmp.lt.u32.totalorder %s763_s15, %s758_s30 }
  0x29   : > { %p767_p13 = scmp.lt.u32.totalorder %s758_s30, %s1060_s7 }
  0x2a   : > { %p761_p6 = pnand %p760_p5, %p759_p4  ;;  %p766_p11 = por %p765_p10, %p764_p3 }
  0x2c   : > { %p762_p7 = pneg %p761_p6  ;;  %p768_p1 = por %p767_p13, %p766_p11 }
  0x2e   : > { %p769_p2 = pnand %p768_p1, %p762_p7 }
  0x30   : > { %772 = shalt.err (!%p769_p2)
}
  0x31   : > { %s773_s27 = scalar_lea.vmem %s1053_s10, 128  ;;  %s922_s8 = smov [#allocation2]  }
  0x32   : > { %p774_p4 = scmp.ne.s32.totalorder %s1053_s10, %s773_s27  ;;  %s778_s11 = sshll.u32 %s922_s8, 4  ;;  %s779_s11 = int_to_ptr.vmem [resolvable:$false] %s778_s11 }
  0x33   : > { %s780_s19 = scalar_lea.vmem %s779_s11, 256  ;;  %p781_p9 = scmp.lt.s32.totalorder %s1053_s10, %s779_s11 }
  0x34   : > { %p776_p6 = pnand %p774_p4, %p760_p5  ;;  %p782_p3 = scmp.lt.s32.totalorder %s780_s19, %s773_s27 }
  0x36   : > { %p777_p12 = pneg %p776_p6  ;;  %p783_p10 = por %p782_p3, %p781_p9 }
  0x38   : > { %p784_p11 = pnand %p783_p10, %p777_p12 }
  0x3a   : > { %787 = shalt.err (!%p784_p11)
}
  0x3b   : > { %676 = dma.hbm_to_vmem [thread:$0]  (!%p1064_p0), %s1060_s7, 128, %s1053_s10, %s236_s20  }
  0x3c   : > { %p1251_p1 = scmp.lt.s32.totalorder %s920_s28, 5  ;;  %p1252_p2 = scmp.ge.s32.totalorder %s920_s28, 1 }
  0x3d   : > { %s1254_s27 = sshll.u32 %s1048_s29, 7  ;;  %s1255_s11 = sshll.u32 %s1040_s17, 3 }
  0x3e   : > { %p1100_p7 = pnand %p1252_p2, %p1251_p1  ;;  %s1109_s8 = scalar_lea.hbm %s1228_s1, %s1254_s27 }
  0x3f   : > { %s259_s19 = scalar_lea.vmem [#allocation5], %s1255_s11  ;;  %s256_s7 = scalar_lea.sflag [#allocation6], %s1040_s17 }
  0x40   : > { %s1253_s14 = scalar_select %p1100_p7, 1, 0 }
  0x41   : > { %s268_s0 = sshll.u32 %s259_s19, 4  ;;  %s788_s10 = scalar_lea.hbm %s1109_s8, 128  ;;  %s269_s0 = int_to_ptr.vmem [resolvable:$true] %s268_s0 }
  0x42   : > { %p789_p9 = scmp.ne.s32.totalorder %s1109_s8, %s788_s10  ;;  %s793_s27 = scalar_lea.hbm %s1228_s1, 512 }
  0x43   : > { %p794_p4 = scmp.lt.u32.totalorder %s1109_s8, %s1228_s1  ;;  %p795_p6 = scmp.lt.u32.totalorder %s793_s27, %s788_s10 }
  0x44   : > { %p791_p12 = pnand %p789_p9, %p760_p5  ;;  %p797_p10 = scmp.lt.u32.totalorder %s788_s10, %s1109_s8 }
  0x45   : > { %p796_p3 = por %p795_p6, %p794_p4 }
  0x46   : > { %p792_p13 = pneg %p791_p12 }
  0x47   : > { %p798_p11 = por %p797_p10, %p796_p3 }
  0x49   : > { %p799_p1 = pnand %p798_p11, %p792_p13 }
  0x4b   : > { %802 = shalt.err (!%p799_p1)
}
  0x4c   : > { %s803_s17 = scalar_lea.vmem %s269_s0, 128  ;;  %s923_s11 = smov [#allocation5]  }
  0x4d   : > { %p804_p2 = scmp.ne.s32.totalorder %s269_s0, %s803_s17  ;;  %s808_s19 = sshll.u32 %s923_s11, 4  ;;  %s809_s19 = int_to_ptr.vmem [resolvable:$false] %s808_s19 }
  0x4e   : > { %s810_s29 = scalar_lea.vmem %s809_s19, 256  ;;  %p811_p8 = scmp.lt.s32.totalorder %s269_s0, %s809_s19 }
  0x4f   : > { %p806_p9 = pnand %p804_p2, %p760_p5  ;;  %p812_p7 = scmp.lt.s32.totalorder %s810_s29, %s803_s17 }
  0x51   : > { %p807_p12 = pneg %p806_p9  ;;  %p813_p4 = por %p812_p7, %p811_p8 }
  0x53   : > { %p814_p6 = pnand %p813_p4, %p807_p12 }
  0x55   : > { %817 = shalt.err (!%p814_p6)
}
  0x56   : > { %679 = dma.hbm_to_vmem [thread:$0]  (!%p1064_p0), %s1109_s8, 128, %s269_s0, %s256_s7  }
  0x57   : > { %p1256_p13 = scmp.ne.s32.totalorder %s1253_s14, 0 }
  0x58   : > { %s1136_s10 = sand.u32 (!%p1256_p13), 1, %s896_s22   ;;  %p1257_p8 = scmp.ne.s32.totalorder (!%p1256_p13), %s1246_s12, 0 }
  0x59   : > { %277 = sbr.rel (%p1256_p13) target bundleno = 578 (0x242), region = 44  ;;  %s1139_s20 = sshll.u32 (!%p1256_p13), %s1136_s10, 3 }
  0x5a   : > { %s280_s27 = scalar_lea.sflag (!%p1256_p13), [#allocation3], %s1136_s10  ;;  %s283_s30 = scalar_lea.vmem (!%p1256_p13), [#allocation2], %s1139_s20 }
  0x60   : > { %879 = dma.done.wait (%p1257_p8), %s280_s27, 128  }
  0x61   : > { %881 = vsyncadd (%p1257_p8), %s280_s27, 4294967168  ;;  %s289_s0 = scalar_lea.sflag [#allocation6], %s1136_s10  ;;  %s292_s9 = scalar_lea.vmem [#allocation5], %s1139_s20 }
  0x62   : > { %883 = dma.done.wait (%p1257_p8), %s289_s0, 128  }
  0x63   : > { %885 = vsyncadd (%p1257_p8), %s289_s0, 4294967168  ;;  %v924_v0 = vmov 0.0   ;;  %vm925_vm0 = vmmov 0   ;;  %v926_v1 = vmov 0   ;;  %vm335_vm1 = vcmask 64512   ;;  %v326_v2 = vld [vmem:[%s283_s30] sm:$0xff] }
  0x64   : > { %657 = vmatprep.subr.mxu0 %v924_v0  ;;  %659 = vmatprep.mubr.msk.f32.mxu0 %vm925_vm0, %v924_v0  ;;  %v328_v3 = vld [vmem:[%s1229_s2] sm:$0x3]  ;;  %vm421_vm2 = vcmask 1041408   ;;  %vm417_vm3 = vcmask 15360   ;;  %s649_s29 = sshll.u32 %s908_s25, 1  ;;  %v327_v19 = vld [vmem:[%s292_s9] sm:$0xff] }
  0x65   : > { %753 = vset.pattern.permute.xlu0 %v926_v1  ;;  %662 = vmatprep.subr.mxu1 %v924_v0  ;;  %v329_v4 = vld [vmem:[%s1230_s3] sm:$0x3]  ;;  %s516_s27 = sadd.s32 %s904_s24, %s649_s29  ;;  %s325_s0 = scalar_lea.vmem [#allocation7], %s1139_s20 }
  0x66   : > { %664 = vmatprep.mubr.msk.f32.mxu1 %vm925_vm0, %v924_v0  ;;  %658 = vmatpush3.msra.mxu0 %v326_v2  ;;  %v411_v5 = vld [vmem:[%s1232_s5] sm:$0xff]  ;;  %s650_s30 = sshll.u32 %s516_s27, 7  ;;  %s520_s14 = sshll.u32 %s325_s0, 4  ;;  %s1175_s14 = int_to_ptr.vmem [resolvable:$true] %s520_s14 }
  0x67   : > { %332 = vperm.xlu0 %753, %v329_v4   ;;  %660 = vmatmul.mubr.msk.f32.vlgmr.msra.gmra.mrb[0].mxu0 %vm335_vm1, %v328_v3  ;;  %v410_v11 = vld [vmem:[%s1231_s4] sm:$0xff]  ;;  %s1173_s15 = scalar_lea.hbm %s1233_s6, %s650_s30  ;;  %s505_s24 = scalar_lea.sflag [#allocation4], %s1136_s10 }
  0x68   : > { %s818_s25 = scalar_lea.vmem %s1175_s14, 128  ;;  %p1258_p5 = scmp.ne.s32.totalorder %s1247_s13, 0 }
  0x69   : > { %p819_p0 = scmp.ne.s32.totalorder %s1175_s14, %s818_s25  ;;  %s927_s20 = smov [#allocation7]  }
  0x6a   : > { %s822_s9 = sshll.u32 %s927_s20, 4  ;;  %s823_s9 = int_to_ptr.vmem [resolvable:$false] %s822_s9 }
  0x6b   : > { %414 = vperm.xlu0 %753, %v411_v5   ;;  %p820_p7 = pnand %p819_p0, %p1258_p5  ;;  %s824_s12 = scalar_lea.vmem %s823_s9, 256 }
  0x6c   : > { %p825_p10 = scmp.lt.s32.totalorder %s1175_s14, %s823_s9  ;;  %p826_p11 = scmp.lt.s32.totalorder %s824_s12, %s818_s25 }
  0x6d   : > { %p821_p3 = pneg %p820_p7 }
  0x6e   : > { %p827_p1 = por %p826_p11, %p825_p10 }
  0x70   : > { %p828_p2 = pnand %p827_p1, %p821_p3 }
  0xe6   : > { %v333_v6 = vpop.permute.xlu0 %332 }
  0xea   : > { %v415_v12 = vpop.permute.xlu0 %414 }
 0x13a   : > { %v405_v7 = vpop.f32.mrb[0].mxu0 }
 0x13b   : > { %v406_v8 = vadd.f32 %v405_v7, %v333_v6  ;;  %v661_v9 = vpop.f32.mrb[1].mxu0 }
 0x13d   : > { %v409_v10 = vmax.f32 %v406_v8, 0.0 }
 0x13f   : > { %663 = vmatpush3.msk.msra.mxu1 %vm421_vm2, %v409_v10 }
 0x140   : > { %665 = vmatmul.mubr.msk.f32.vlgmr.msra.gmra.mrb[0].mxu1 %vm417_vm3, %v410_v11 }
 0x213   : > { %v491_v13 = vpop.f32.mrb[0].mxu1 }
 0x214   : > { %v492_v14 = vadd.f32 %v491_v13, %v415_v12  ;;  %v666_v15 = vpop.f32.mrb[1].mxu1 }
 0x216   : > { %v647_v16 = vmul.f32 -1.442695, %v492_v14 }
 0x218   : > { %754 = vpow2.f32 %v647_v16 }
 0x222   : > { %v755_v17 = vpop.eup %754 }
 0x223   : > { %v498_v18 = vadd.f32 1.0, %v755_v17 }
 0x225   : > { %756 = vrcp.f32 %v498_v18 }
 0x22f   : > { %v757_v20 = vpop.eup %756 }
 0x230   : > { %v501_v21 = vmul.f32 %v757_v20, %v327_v19 }
 0x232   : > { %v502_v22 = vadd.f32 %v501_v21, %v326_v2 }
 0x234   : > { %503 = vst [vmem:[%s325_s0] sm:$0xff] %v502_v22 }
 0x235   : > { %831 = shalt.err (!%p828_p2)
}
 0x236   : > { %s832_s10 = scalar_lea.hbm %s1173_s15, 128  ;;  %s836_s19 = scalar_lea.hbm %s1233_s6, 512 }
 0x237   : > { %p833_p9 = scmp.ne.s32.totalorder %s1173_s15, %s832_s10  ;;  %p837_p6 = scmp.lt.u32.totalorder %s1173_s15, %s1233_s6 }
 0x238   : > { %p838_p13 = scmp.lt.u32.totalorder %s836_s19, %s832_s10  ;;  %p840_p0 = scmp.lt.u32.totalorder %s832_s10, %s1173_s15 }
 0x239   : > { %p834_p12 = pnand %p833_p9, %p1258_p5 }
 0x23a   : > { %p839_p8 = por %p838_p13, %p837_p6 }
 0x23b   : > { %p835_p4 = pneg %p834_p12 }
 0x23c   : > { %p841_p7 = por %p840_p0, %p839_p8 }
 0x23e   : > { %p842_p3 = pnand %p841_p7, %p835_p4 }
 0x240   : > { %845 = shalt.err (!%p842_p3)
}
 0x241   : > { %671 = dma.vmem_to_hbm [thread:$0]  (%p1258_p5), %s1175_s14, 128, %s1173_s15, %s505_s24  }
 0x242 PF: > { %p685_p10 = scmp.ge.s32.totalorder %s920_s28, 2  ;;  %s532_s30 = sand.u32 1, %s892_s21  }
 0x243   : > { %p1259_p11 = scmp.ne.s32.totalorder %s1248_s16, 0  ;;  %s533_s0 = scalar_lea.sflag [#allocation4], %s532_s30 }
 0x245   : > { %p681_p1 = pnand %p685_p10, %p1259_p11 }
 0x247   : > { %887 = dma.done.wait (!%p681_p1), %s533_s0, 128  }
 0x248   : > { %889 = vsyncadd (!%p681_p1), %s533_s0, 4294967168  ;;  %s25_s28 = sadd.s32 1, %s920_s28   ;;  %s1260_s25 = sld [smem:[#allocation11_spill]] }
 0x249   : > { %p22_p2 = scmp.ge.s32.totalorder %s25_s28, 6   ;;  %s1261_s13 = sld [smem:[#allocation12_spill]] }
 0x24a   : > { %s1262_s27 = sld [smem:[#allocation13_spill]]  ;;  %s1263_s21 = smov %s896_s22 }
 0x24b   : > { %s1264_s22 = smov %s900_s23  ;;  %s1265_s23 = smov %s1043_s18 }
 0x24c   : > { %s1266_s24 = smov %s912_s26  ;;  %24 = sbr.rel (!%p22_p2) target bundleno = 11 (0xb), region = 102 }
 0x24f   : > { %s1267_s26 = smov %s1261_s13 }
 0x253   :  { %538 = vsyncpa [#allocation3], 1 }
 0x254   :  { %540 = vsyncpa [#allocation3 + $0x1], 1 }
 0x255   :  { %541 = vsyncpa [#allocation6], 1 }
 0x256   :  { %543 = vsyncpa [#allocation6 + $0x1], 1 }
 0x257   :  { %544 = vsyncpa [#allocation4], 1 }
 0x258   :  { %546 = vsyncpa [#allocation4 + $0x1], 1 }

</bundles_post_ra>
